<compile_context>
chip_gen: v7x
topology: tpu7x:2x2x1
jax: 0.10.0
libtpu: 0.0.40
codegen_flags: <defaults>
</compile_context>

<pallas_src>
import functools

import jax
import jax.numpy as jnp
from jax import lax
from jax.experimental import pallas as pl
from jax.experimental.pallas import tpu as pltpu

EPS = 1e-5
LANE = 128


# ----------------------------------------------------------------------------
# small helpers
# ----------------------------------------------------------------------------
def _round_up(x, m):
    return ((x + m - 1) // m) * m


_VMEM_LIMIT = None


def _vmem_limit_bytes():
    """Per-generation scoped-VMEM limit (v5e/v6e: 128 MiB, v7x: 64 MiB)."""
    global _VMEM_LIMIT
    if _VMEM_LIMIT is None:
        limit = 48 * 1024 * 1024  # safe fallback (fits v7x)
        try:
            info_fn = getattr(pltpu, "get_tpu_info", None)
            if info_fn is not None:
                cap = getattr(info_fn(), "vmem_capacity_bytes", None)
                if cap:
                    limit = int(min(int(cap) * 3 // 4, 100 * 1024 * 1024))
        except Exception:
            pass
        _VMEM_LIMIT = limit
    return _VMEM_LIMIT


def _compiler_params(semantics):
    return pltpu.CompilerParams(dimension_semantics=semantics,
                                vmem_limit_bytes=_vmem_limit_bytes())


def _pad2(a, rows, cols):
    r, c = a.shape
    if r == rows and c == cols:
        return a
    return jnp.pad(a, ((0, rows - r), (0, cols - c)))


def _pad_vec(v, cols):
    return jnp.pad(v, (0, cols - v.shape[0])).reshape(1, cols)


def _choose_tm(m, target):
    """Largest row tile (multiple of 8, <= target) dividing m; else pad rows."""
    target = max(8, (target // 8) * 8)
    if m % 8 == 0:
        for t in range(min(target, m), 0, -8):
            if m % t == 0:
                return t, m
    tm = min(target, _round_up(m, 8))
    return tm, _round_up(m, tm)


def _bn_fold(partial_stats, gamma_p, beta_p, count):
    """Fold per-tile (sum, sumsq) partials into per-channel scale/shift."""
    st = jnp.sum(partial_stats, axis=0)               # (2, C)
    mean = st[0:1, :] / count
    var = st[1:2, :] / count - mean * mean            # one-pass var, f32
    scale = gamma_p * lax.rsqrt(jnp.maximum(var, 0.0) + EPS)
    shift = beta_p - mean * scale
    return scale, shift


# ----------------------------------------------------------------------------
# Kernel 1: 1x1 conv (matmul) fused with partial BN statistics
# ----------------------------------------------------------------------------
def _matmul_stats_kernel(x_ref, w_ref, y_ref, st_ref, *, compute_dtype):
    x = x_ref[...]
    w = w_ref[...]
    if compute_dtype is not None:
        x = x.astype(compute_dtype)
        w = w.astype(compute_dtype)
    y = jnp.dot(x, w, preferred_element_type=jnp.float32)
    y_ref[...] = y
    st_ref[0, 0:1, :] = jnp.sum(y, axis=0, keepdims=True)
    st_ref[0, 1:2, :] = jnp.sum(y * y, axis=0, keepdims=True)


def conv1x1_stats(x, w, *, tm, compute_dtype=None):
    """x: (M_pad, K_pad) f32, w: (K_pad, C_pad) -> (y, partial_stats(G,2,C))."""
    mpad, kp = x.shape
    cp = w.shape[1]
    g = mpad // tm
    kern = functools.partial(_matmul_stats_kernel, compute_dtype=compute_dtype)
    return pl.pallas_call(
        kern, grid=(g,),
        in_specs=[pl.BlockSpec((tm, kp), lambda i: (i, 0)),
                  pl.BlockSpec((kp, cp), lambda i: (0, 0))],
        out_specs=(pl.BlockSpec((tm, cp), lambda i: (i, 0)),
                   pl.BlockSpec((1, 2, cp), lambda i: (i, 0, 0))),
        out_shape=(jax.ShapeDtypeStruct((mpad, cp), jnp.float32),
                   jax.ShapeDtypeStruct((g, 2, cp), jnp.float32)),
        compiler_params=_compiler_params(("parallel",)),
    )(x, w)


# ----------------------------------------------------------------------------
# Kernel 2: generic fused BN-apply stage
#   out = [relu]( relu?(y*scale+shift) [@ w] + [residual | residual*rs+rb] )
# optionally emitting partial (sum, sumsq) of the result for the next BN.
# ----------------------------------------------------------------------------
def _bn_stage_kernel(*refs, has_matmul, has_residual, res_affine,
                     relu_after_bn, relu_at_end, emit_stats, valid_rows, tm,
                     compute_dtype):
    it = iter(refs)
    y_ref = next(it)
    sc_ref = next(it)
    sh_ref = next(it)
    w_ref = next(it) if has_matmul else None
    r_ref = next(it) if has_residual else None
    if has_residual and res_affine:
        rsc_ref = next(it)
        rsh_ref = next(it)
    o_ref = next(it)
    st_ref = next(it) if emit_stats else None

    t = y_ref[...] * sc_ref[...] + sh_ref[...]
    if relu_after_bn:
        t = jnp.maximum(t, 0.0)
    if has_matmul:
        lhs, rhs = t, w_ref[...]
        if compute_dtype is not None:
            lhs = lhs.astype(compute_dtype)
            rhs = rhs.astype(compute_dtype)
        t = jnp.dot(lhs, rhs, preferred_element_type=jnp.float32)
    if has_residual:
        r = r_ref[...]
        if res_affine:
            r = r * rsc_ref[...] + rsh_ref[...]
        t = t + r
    if relu_at_end:
        t = jnp.maximum(t, 0.0)
    o_ref[...] = t

    if emit_stats:
        tt = t
        if valid_rows is not None:  # mask padded (garbage) rows in last tiles
            row = (pl.program_id(0) * tm
                   + lax.broadcasted_iota(jnp.int32, (tm, 1), 0))
            tt = jnp.where(row < valid_rows, t, 0.0)
        st_ref[0, 0:1, :] = jnp.sum(tt, axis=0, keepdims=True)
        st_ref[0, 1:2, :] = jnp.sum(tt * tt, axis=0, keepdims=True)


def bn_stage(y, scale, shift, *, tm, relu_after_bn=False, relu_at_end=False,
             w=None, residual=None, res_scale=None, res_shift=None,
             emit_stats=False, valid_rows=None, compute_dtype=None):
    mpad, cin = y.shape
    cout = w.shape[1] if w is not None else cin
    g = mpad // tm

    inputs = [y, scale, shift]
    in_specs = [pl.BlockSpec((tm, cin), lambda i: (i, 0)),
                pl.BlockSpec((1, cin), lambda i: (0, 0)),
                pl.BlockSpec((1, cin), lambda i: (0, 0))]
    if w is not None:
        inputs.append(w)
        in_specs.append(pl.BlockSpec((cin, cout), lambda i: (0, 0)))
    if residual is not None:
        inputs.append(residual)
        in_specs.append(pl.BlockSpec((tm, cout), lambda i: (i, 0)))
        if res_scale is not None:
            inputs += [res_scale, res_shift]
            in_specs += [pl.BlockSpec((1, cout), lambda i: (0, 0)),
                         pl.BlockSpec((1, cout), lambda i: (0, 0))]

    if emit_stats:
        out_shape = (jax.ShapeDtypeStruct((mpad, cout), jnp.float32),
                     jax.ShapeDtypeStruct((g, 2, cout), jnp.float32))
        out_specs = (pl.BlockSpec((tm, cout), lambda i: (i, 0)),
                     pl.BlockSpec((1, 2, cout), lambda i: (i, 0, 0)))
    else:
        out_shape = jax.ShapeDtypeStruct((mpad, cout), jnp.float32)
        out_specs = pl.BlockSpec((tm, cout), lambda i: (i, 0))

    kern = functools.partial(
        _bn_stage_kernel,
        has_matmul=(w is not None), has_residual=(residual is not None),
        res_affine=(res_scale is not None), relu_after_bn=relu_after_bn,
        relu_at_end=relu_at_end, emit_stats=emit_stats, valid_rows=valid_rows,
        tm=tm, compute_dtype=compute_dtype)

    return pl.pallas_call(
        kern, grid=(g,), in_specs=in_specs, out_specs=out_specs,
        out_shape=out_shape, compiler_params=_compiler_params(("parallel",)),
    )(*inputs)


# ----------------------------------------------------------------------------
# Kernel 3: grouped 3x3 conv fused with bn1-apply+ReLU (input side) and with
# partial bn2 statistics (output side).  One image per grid step; halo handled
# in a VMEM scratch (stride 1) or via wrapper-built parity planes (stride 2).
# ----------------------------------------------------------------------------
def _conv3x3_s1_kernel(y_ref, sc_ref, sh_ref, w_ref, o_ref, st_ref, xpad_ref,
                       *, h, w, compute_dtype):
    cp = o_ref.shape[-1]
    # bn1 apply + ReLU, written into a freshly zeroed padded VMEM scratch.
    xpad_ref[...] = jnp.zeros_like(xpad_ref)
    xpad_ref[1:h + 1, 1:w + 1, :] = jnp.maximum(
        y_ref[0] * sc_ref[...] + sh_ref[...], 0.0)

    acc = jnp.zeros((h * w, cp), jnp.float32)
    for ky in range(3):  # the three kx taps fused into one K = 3*Cp matmul
        lhs = jnp.concatenate(
            [xpad_ref[ky:ky + h, kx:kx + w, :] for kx in range(3)],
            axis=-1).reshape(h * w, 3 * cp)
        rhs = w_ref[ky]
        if compute_dtype is not None:
            lhs = lhs.astype(compute_dtype)
            rhs = rhs.astype(compute_dtype)
        acc = acc + jnp.dot(lhs, rhs, preferred_element_type=jnp.float32)

    o_ref[0] = acc.reshape(h, w, cp)
    st_ref[0, 0:1, :] = jnp.sum(acc, axis=0, keepdims=True)
    st_ref[0, 1:2, :] = jnp.sum(acc * acc, axis=0, keepdims=True)


def conv3x3_s1(y1_img, scale1, shift1, w_taps, *, compute_dtype=None):
    """y1_img: (N, H, W, Cp) raw conv1 output; BN1+ReLU applied in-kernel."""
    n, h, w, cp = y1_img.shape
    kern = functools.partial(_conv3x3_s1_kernel, h=h, w=w,
                             compute_dtype=compute_dtype)
    return pl.pallas_call(
        kern, grid=(n,),
        in_specs=[pl.BlockSpec((1, h, w, cp), lambda i: (i, 0, 0, 0)),
                  pl.BlockSpec((1, cp), lambda i: (0, 0)),
                  pl.BlockSpec((1, cp), lambda i: (0, 0)),
                  pl.BlockSpec((3, 3 * cp, cp), lambda i: (0, 0, 0))],
        out_specs=(pl.BlockSpec((1, h, w, cp), lambda i: (i, 0, 0, 0)),
                   pl.BlockSpec((1, 2, cp), lambda i: (i, 0, 0))),
        out_shape=(jax.ShapeDtypeStruct((n, h, w, cp), jnp.float32),
                   jax.ShapeDtypeStruct((n, 2, cp), jnp.float32)),
        scratch_shapes=[pltpu.VMEM((h + 2, w + 2, cp), jnp.float32)],
        compiler_params=_compiler_params(("parallel",)),
    )(y1_img, scale1, shift1, w_taps)


def _conv3x3_s2_kernel(p_ref, w_ref, o_ref, st_ref, *, h_out, w_out,
                       compute_dtype):
    cp = o_ref.shape[-1]
    acc = jnp.zeros((h_out * w_out, cp), jnp.float32)
    for ky in range(3):
        parts = []
        for kx in range(3):
            plane = (ky % 2) * 2 + (kx % 2)
            r0, c0 = ky // 2, kx // 2
            parts.append(p_ref[0, plane, r0:r0 + h_out, c0:c0 + w_out, :])
        lhs = jnp.concatenate(parts, axis=-1).reshape(h_out * w_out, 3 * cp)
        rhs = w_ref[ky]
        if compute_dtype is not None:
            lhs = lhs.astype(compute_dtype)
            rhs = rhs.astype(compute_dtype)
        acc = acc + jnp.dot(lhs, rhs, preferred_element_type=jnp.float32)

    o_ref[0] = acc.reshape(h_out, w_out, cp)
    st_ref[0, 0:1, :] = jnp.sum(acc, axis=0, keepdims=True)
    st_ref[0, 1:2, :] = jnp.sum(acc * acc, axis=0, keepdims=True)


def conv3x3_s2(planes, w_taps, *, h_out, w_out, compute_dtype=None):
    """planes: (N, 4, h_out+1, w_out+1, Cp) padded parity planes (stride 2)."""
    n, _, hq, wq, cp = planes.shape
    kern = functools.partial(_conv3x3_s2_kernel, h_out=h_out, w_out=w_out,
                             compute_dtype=compute_dtype)
    return pl.pallas_call(
        kern, grid=(n,),
        in_specs=[pl.BlockSpec((1, 4, hq, wq, cp), lambda i: (i, 0, 0, 0, 0)),
                  pl.BlockSpec((3, 3 * cp, cp), lambda i: (0, 0, 0))],
        out_specs=(pl.BlockSpec((1, h_out, w_out, cp), lambda i: (i, 0, 0, 0)),
                   pl.BlockSpec((1, 2, cp), lambda i: (i, 0, 0))),
        out_shape=(jax.ShapeDtypeStruct((n, h_out, w_out, cp), jnp.float32),
                   jax.ShapeDtypeStruct((n, 2, cp), jnp.float32)),
        compiler_params=_compiler_params(("parallel",)),
    )(planes, w_taps)


def _grouped_taps_fused(w2, bot, group_count, cp):
    """(bot, bot/G, 3, 3) grouped OIHW weight -> (3, 3*Cp, Cp) fused taps."""
    # TODO(synk): for bot > 128 loop groups instead of dense block-diagonal.
    gw = bot // group_count
    taps = jnp.zeros((9, cp, cp), jnp.float32)
    for g in range(group_count):
        sl = slice(g * gw, (g + 1) * gw)
        blk = jnp.transpose(w2[sl], (2, 3, 1, 0)).reshape(9, gw, gw)
        taps = taps.at[:, sl, sl].set(blk)
    return taps.reshape(3, 3, cp, cp).reshape(3, 3 * cp, cp)


# ----------------------------------------------------------------------------
# Wrapper: full ResNeXt block forward (training-mode BatchNorm)
# ----------------------------------------------------------------------------
def resnext_block_forward(x_nchw, params, *, num_channels, groups, bot_mul,
                          use_1x1conv=False, strides=1, tm_target=1024,
                          matmul_dtype=jnp.bfloat16):
    assert strides in (1, 2), "only strides 1 and 2 are implemented"
    bot = int(round(num_channels * bot_mul))
    conv_groups = bot // groups             # group count of the 3x3 conv
    n, cin, h, w = x_nchw.shape
    if not use_1x1conv:
        assert cin == num_channels and strides == 1, (
            "identity residual requires Cin == num_channels and strides == 1")
    h_out = (h - 1) // strides + 1
    w_out = (w - 1) // strides + 1

    cin_p = _round_up(cin, LANE)
    cb_p = _round_up(bot, LANE)
    co_p = _round_up(num_channels, LANE)
    wdt = jnp.float32 if matmul_dtype is None else matmul_dtype

    x_nhwc = jnp.transpose(x_nchw, (0, 2, 3, 1)).astype(jnp.float32)

    # ---- stage 1: conv1 (1x1) + partial bn1 statistics ----------------------
    m1 = n * h * w
    tm1, m1_pad = _choose_tm(m1, tm_target)
    x_flat = _pad2(x_nhwc.reshape(m1, cin), m1_pad, cin_p)
    w1 = _pad2(params["w1"][:, :, 0, 0].T, cin_p, cb_p).astype(wdt)
    y1_raw, st1 = conv1x1_stats(x_flat, w1, tm=tm1, compute_dtype=matmul_dtype)
    scale1, shift1 = _bn_fold(st1, _pad_vec(params["g1"], cb_p),
                              _pad_vec(params["beta1"], cb_p), m1)

    # ---- stage 2: bn1+ReLU + grouped 3x3 conv + partial bn2 statistics ------
    w_taps = _grouped_taps_fused(params["w2"], bot, conv_groups, cb_p).astype(wdt)
    y1_src = y1_raw if m1_pad == m1 else y1_raw[:m1]
    if strides == 1:
        y1_img = y1_src.reshape(n, h, w, cb_p)
        y2, st2 = conv3x3_s1(y1_img, scale1, shift1, w_taps,
                             compute_dtype=matmul_dtype)
    else:
        # stride 2: apply bn1+ReLU here, then space-to-depth split into the
        # four parity planes of the padding=1 halo so the kernel computes only
        # the kept output positions.
        y1n = jnp.maximum(y1_src * scale1 + shift1, 0.0).reshape(n, h, w, cb_p)
        pad_h = 2 * h_out + 1 - h
        pad_w = 2 * w_out + 1 - w
        xpad = jnp.pad(y1n, ((0, 0), (1, pad_h), (1, pad_w), (0, 0)))
        planes = jnp.stack([xpad[:, pr::2, pc::2, :]
                            for pr in (0, 1) for pc in (0, 1)], axis=1)
        y2, st2 = conv3x3_s2(planes, w_taps, h_out=h_out, w_out=w_out,
                             compute_dtype=matmul_dtype)
    m2 = n * h_out * w_out
    scale2, shift2 = _bn_fold(st2, _pad_vec(params["g2"], cb_p),
                              _pad_vec(params["beta2"], cb_p), m2)

    # ---- stage 3: bn2+ReLU + conv3 (1x1) + partial bn3 statistics -----------
    tm2, m2_pad = _choose_tm(m2, tm_target)
    y2_flat = y2.reshape(m2, cb_p)
    if m2_pad != m2:
        y2_flat = jnp.pad(y2_flat, ((0, m2_pad - m2), (0, 0)))
    w3 = _pad2(params["w3"][:, :, 0, 0].T, cb_p, co_p).astype(wdt)
    y3_raw, st3 = bn_stage(
        y2_flat, scale2, shift2, tm=tm2, relu_after_bn=True, w=w3,
        emit_stats=True, valid_rows=(None if m2_pad == m2 else m2),
        compute_dtype=matmul_dtype)
    scale3, shift3 = _bn_fold(st3, _pad_vec(params["g3"], co_p),
                              _pad_vec(params["beta3"], co_p), m2)

    # ---- stage 4: residual branch + bn3 apply + add + final ReLU ------------
    if use_1x1conv:
        x_sub = x_nhwc[:, ::strides, ::strides, :]
        xs_flat = _pad2(x_sub.reshape(m2, cin), m2_pad, cin_p)
        w4 = _pad2(params["w4"][:, :, 0, 0].T, cin_p, co_p).astype(wdt)
        y4_raw, st4 = conv1x1_stats(xs_flat, w4, tm=tm2,
                                    compute_dtype=matmul_dtype)
        scale4, shift4 = _bn_fold(st4, _pad_vec(params["g4"], co_p),
                                  _pad_vec(params["beta4"], co_p), m2)
        out_flat = bn_stage(y3_raw, scale3, shift3, tm=tm2, relu_at_end=True,
                            residual=y4_raw, res_scale=scale4,
                            res_shift=shift4)
    else:
        # identity residual: x_flat already has matching row/channel padding
        out_flat = bn_stage(y3_raw, scale3, shift3, tm=tm2, relu_at_end=True,
                            residual=x_flat)

    out = out_flat[:m2, :num_channels].reshape(n, h_out, w_out, num_channels)
    return jnp.transpose(out, (0, 3, 1, 2))


# ----------------------------------------------------------------------------
# Pure-JAX reference (PyTorch semantics incl. conv biases) for validation
# ----------------------------------------------------------------------------
def _ref_conv(x, w, b, stride=1, padding=0, groups=1):
    y = lax.conv_general_dilated(
        x, w, (stride, stride), [(padding, padding)] * 2,
        dimension_numbers=("NCHW", "OIHW", "NCHW"),
        feature_group_count=groups)
    return y + b.reshape(1, -1, 1, 1)


def _ref_bn(x, g, b):
    mean = x.mean(axis=(0, 2, 3), keepdims=True)
    var = x.var(axis=(0, 2, 3), keepdims=True)           # biased variance
    y = (x - mean) * lax.rsqrt(var + EPS)
    return y * g.reshape(1, -1, 1, 1) + b.reshape(1, -1, 1, 1)


def resnext_block_reference(x, p, *, num_channels, groups, bot_mul,
                            use_1x1conv=False, strides=1):
    bot = int(round(num_channels * bot_mul))
    conv_groups = bot // groups
    y = jax.nn.relu(_ref_bn(_ref_conv(x, p["w1"], p["b1"]), p["g1"], p["beta1"]))
    y = jax.nn.relu(_ref_bn(_ref_conv(y, p["w2"], p["b2"], stride=strides,
                                      padding=1, groups=conv_groups),
                            p["g2"], p["beta2"]))
    y = _ref_bn(_ref_conv(y, p["w3"], p["b3"]), p["g3"], p["beta3"])
    if use_1x1conv:
        x = _ref_bn(_ref_conv(x, p["w4"], p["b4"], stride=strides),
                    p["g4"], p["beta4"])
    return jax.nn.relu(y + x)


def make_params(key, *, cin, num_channels, groups, bot_mul, use_1x1conv,
                strides=1):
    del strides
    bot = int(round(num_channels * bot_mul))
    conv_groups = bot // groups
    keys = iter(jax.random.split(key, 20))

    def rnd(shape, scale=0.1):
        return scale * jax.random.normal(next(keys), shape, jnp.float32)

    p = {
        "w1": rnd((bot, cin, 1, 1)), "b1": rnd((bot,)),
        "w2": rnd((bot, bot // conv_groups, 3, 3)), "b2": rnd((bot,)),
        "w3": rnd((num_channels, bot, 1, 1)), "b3": rnd((num_channels,)),
        "g1": 1.0 + rnd((bot,)), "beta1": rnd((bot,)),
        "g2": 1.0 + rnd((bot,)), "beta2": rnd((bot,)),
        "g3": 1.0 + rnd((num_channels,)), "beta3": rnd((num_channels,)),
    }
    if use_1x1conv:
        p["w4"] = rnd((num_channels, cin, 1, 1))
        p["b4"] = rnd((num_channels,))
        p["g4"] = 1.0 + rnd((num_channels,))
        p["beta4"] = rnd((num_channels,))
    return p


# ----------------------------------------------------------------------------
# Main
# ----------------------------------------------------------------------------
if __name__ == "__main__":
    key = jax.random.PRNGKey(0)
    k_pa, k_xa, k_pb, k_xb = jax.random.split(key, 4)

    # Config A: identity residual (Cin == num_channels, stride 1).
    cfg_a = dict(num_channels=16, groups=4, bot_mul=0.5,
                 use_1x1conv=False, strides=1)
    params_a = make_params(k_pa, cin=16, **cfg_a)
    x_a = jax.random.normal(k_xa, (2, 16, 8, 8), jnp.float32)   # NCHW
    ref_a = jax.block_until_ready(resnext_block_reference(x_a, params_a, **cfg_a))

    # exact f32 MXU run (tight tolerance vs. the f32 reference)
    out_a32 = jax.block_until_ready(
        resnext_block_forward(x_a, params_a, matmul_dtype=None, **cfg_a))
    assert out_a32.shape == (2, 16, 8, 8), out_a32.shape
    err_a32 = float(jnp.max(jnp.abs(out_a32 - ref_a)))
    assert jnp.allclose(out_a32, ref_a, rtol=1e-3, atol=1e-3), err_a32

    # bf16 MXU run (f32 accumulation) -- looser tolerance
    out_a16 = jax.block_until_ready(
        resnext_block_forward(x_a, params_a, matmul_dtype=jnp.bfloat16, **cfg_a))
    err_a16 = float(jnp.max(jnp.abs(out_a16 - ref_a)))
    assert jnp.allclose(out_a16, ref_a, rtol=3e-2, atol=3e-2), err_a16

    # Config B: projection residual (conv4 + bn4), stride 2, Cin != Cout.
    cfg_b = dict(num_channels=32, groups=8, bot_mul=0.5,
                 use_1x1conv=True, strides=2)
    params_b = make_params(k_pb, cin=16, **cfg_b)
    x_b = jax.random.normal(k_xb, (2, 16, 16, 16), jnp.float32)  # NCHW
    ref_b = jax.block_until_ready(resnext_block_reference(x_b, params_b, **cfg_b))
    out_b = jax.block_until_ready(
        resnext_block_forward(x_b, params_b, matmul_dtype=None, **cfg_b))
    assert out_b.shape == (2, 32, 8, 8), out_b.shape
    err_b = float(jnp.max(jnp.abs(out_b - ref_b)))
    assert jnp.allclose(out_b, ref_b, rtol=1e-3, atol=1e-3), err_b

    print("KERNEL_OK")
</pallas_src>

<mosaic_0001>
module attributes {stable_mosaic.version = 11 : i64} {
  func.func @_matmul_stats_kernel(%arg0: i32, %arg1: memref<128x128xf32, #tpu.memory_space<vmem>>, %arg2: memref<128x128xf32, #tpu.memory_space<vmem>>, %arg3: memref<128x128xf32, #tpu.memory_space<vmem>>, %arg4: memref<1x2x128xf32, #tpu.memory_space<vmem>>) attributes {dimension_semantics = [#tpu.dimension_semantics<parallel>], iteration_bounds = array<i64: 1>, scalar_prefetch = 0 : i64, scratch_operands = 0 : i64, tpu.core_type = #tpu.core_type<tc>, window_params = [{transform_indices = @transform_0, window_bounds = array<i64: 128, 128>}, {pipeline_mode = #tpu.pipeline_mode<synchronous>, transform_indices = @transform_1, window_bounds = array<i64: 128, 128>}, {transform_indices = @transform_2, window_bounds = array<i64: 128, 128>}, {transform_indices = @transform_3, window_bounds = array<i64: 1, 2, 128>}]} {
    %c0 = arith.constant 0 : index
    %c0_0 = arith.constant 0 : index
    %0 = vector.load %arg1[%c0, %c0_0] : memref<128x128xf32, #tpu.memory_space<vmem>>, vector<128x128xf32>
    %c0_1 = arith.constant 0 : index
    %c0_2 = arith.constant 0 : index
    %1 = vector.load %arg2[%c0_1, %c0_2] : memref<128x128xf32, #tpu.memory_space<vmem>>, vector<128x128xf32>
    %cst = arith.constant dense<0.000000e+00> : vector<128x128xf32>
    %2 = tpu.matmul %0, %1, %cst {dimension_numbers = #tpu.dot_dimension_numbers<[1], [0], [0], [1], [0, 0, 1, 1], [], []>} : vector<128x128xf32>, vector<128x128xf32>, vector<128x128xf32> -> vector<128x128xf32>
    %c0_3 = arith.constant 0 : index
    %c0_4 = arith.constant 0 : index
    %3 = vector.load %arg3[%c0_3, %c0_4] : memref<128x128xf32, #tpu.memory_space<vmem>>, vector<128x128xf32>
    tpu.vector_store %arg3[%c0_3, %c0_4], %2 {strides = array<i32>} : memref<128x128xf32, #tpu.memory_space<vmem>>, vector<128x128xf32>,
    %cst_5 = arith.constant dense<0.000000e+00> : vector<128xf32>
    %4 = vector.multi_reduction <add>, %2, %cst_5 [0] : vector<128x128xf32> to vector<128xf32>
    %5 = vector.shape_cast %4 : vector<128xf32> to vector<1x128xf32>
    %c0_6 = arith.constant 0 : index
    %c0_7 = arith.constant 0 : index
    %c0_8 = arith.constant 0 : index
    %6 = vector.load %arg4[%c0_6, %c0_7, %c0_8] : memref<1x2x128xf32, #tpu.memory_space<vmem>>, vector<1x1x128xf32>
    %7 = vector.shape_cast %6 : vector<1x1x128xf32> to vector<1x128xf32>
    %8 = vector.shape_cast %5 : vector<1x128xf32> to vector<1x1x128xf32>
    tpu.vector_store %arg4[%c0_6, %c0_7, %c0_8], %8 {strides = array<i32>} : memref<1x2x128xf32, #tpu.memory_space<vmem>>, vector<1x1x128xf32>,
    %9 = arith.mulf %2, %2 : vector<128x128xf32>
    %cst_9 = arith.constant dense<0.000000e+00> : vector<128xf32>
    %10 = vector.multi_reduction <add>, %9, %cst_9 [0] : vector<128x128xf32> to vector<128xf32>
    %11 = vector.shape_cast %10 : vector<128xf32> to vector<1x128xf32>
    %c0_10 = arith.constant 0 : index
    %c1 = arith.constant 1 : index
    %c0_11 = arith.constant 0 : index
    %12 = vector.load %arg4[%c0_10, %c1, %c0_11] : memref<1x2x128xf32, #tpu.memory_space<vmem>>, vector<1x1x128xf32>
    %13 = vector.shape_cast %12 : vector<1x1x128xf32> to vector<1x128xf32>
    %14 = vector.shape_cast %11 : vector<1x128xf32> to vector<1x1x128xf32>
    tpu.vector_store %arg4[%c0_10, %c1, %c0_11], %14 {strides = array<i32>} : memref<1x2x128xf32, #tpu.memory_space<vmem>>, vector<1x1x128xf32>,
    return
  }
  func.func @transform_0(%arg0: i32) -> (i32, i32) {
    %c0_i32 = arith.constant 0 : i32
    %c0_i32_0 = arith.constant 0 : i32
    return %arg0, %c0_i32 : i32, i32
  }
  func.func @transform_1(%arg0: i32) -> (i32, i32) {
    %c0_i32 = arith.constant 0 : i32
    %c0_i32_0 = arith.constant 0 : i32
    %c0_i32_1 = arith.constant 0 : i32
    return %c0_i32, %c0_i32_0 : i32, i32
  }
  func.func @transform_2(%arg0: i32) -> (i32, i32) {
    %c0_i32 = arith.constant 0 : i32
    %c0_i32_0 = arith.constant 0 : i32
    return %arg0, %c0_i32 : i32, i32
  }
  func.func @transform_3(%arg0: i32) -> (i32, i32, i32) {
    %c0_i32 = arith.constant 0 : i32
    %c0_i32_0 = arith.constant 0 : i32
    %c0_i32_1 = arith.constant 0 : i32
    return %arg0, %c0_i32, %c0_i32_0 : i32, i32, i32
  }
}

</mosaic_0001>

<bundles_post_ra>
// kernel: tpu_custom_call.1
= control target key start
LH: loop header
LB: loop body
LE: loop exit
PB: predicated region body
PF: predicated region fallthrough
CT: control target
= control target key end

     0   :  { %9 = vsyncpa [#allocation3], 0  ;;  %s667_s0 = inlined_call_operand.hbm [shape: f32[128,128], index: 0, kind: input, shape index: {}]   ;;  %s668_s1 = inlined_call_operand.hbm [shape: f32[128,128], index: 1, kind: input, shape index: {}]   ;;  %s669_s2 = inlined_call_operand.hbm [shape: f32[128,128], index: 2, kind: output, shape index: {0}]   ;;  %s670_s3 = inlined_call_operand.hbm [shape: f32[1,2,128], index: 3, kind: output, shape index: {1}]  }
   0x1   :  { %10 = vsyncpa [#allocation6], 0 }
   0x2   :  { %11 = vsyncpa [#allocation4], 0 }
   0x3   :  { %12 = vsyncpa [#allocation9], 0  ;;  %s566_s12 = smov [#allocation2]   ;;  %s470_s16 = scalar_lea.hbm %s667_s0, 2048 }
   0x4   :  { %s18_s13 = sshll.u32 %s566_s12, 4  ;;  %p471_p0 = scmp.ne.s32.totalorder %s667_s0, %s470_s16  ;;  %s19_s13 = int_to_ptr.vmem [resolvable:$true] %s18_s13 }
   0x5   :  { %p474_p1 = scmp.lt.u32.totalorder %s470_s16, %s667_s0 }
   0x7   :  { %p476_p2 = pnand %p474_p1, %p471_p0 }
   0x9   :  { %479 = shalt.err (!%p476_p2)
}
   0xa   :  { %s480_s21 = scalar_lea.vmem %s19_s13, 2048  ;;  %p485_p4 = scmp.lt.s32.totalorder %s19_s13, %s19_s13 }
   0xb   :  { %p481_p3 = scmp.ne.s32.totalorder %s19_s13, %s480_s21  ;;  %p486_p5 = scmp.lt.s32.totalorder %s480_s21, %s480_s21 }
   0xd   :  { %p487_p6 = por %p486_p5, %p485_p4 }
   0xf   :  { %p488_p7 = pnand %p487_p6, %p481_p3 }
  0x11   :  { %491 = shalt.err (!%p488_p7)
}
  0x12   :  { %s567_s22 = smov 128   ;;  %s568_s23 = smov 8  }
  0x13   :  { %24 = dma.hbm_to_vmem [thread:$0]  %s667_s0, 2048, %s19_s13, [#allocation3], %s567_s22, %s567_s22, %s568_s23  }
  0x14   :  { %s569_s26 = smov [#allocation5]   ;;  %s492_s30 = scalar_lea.hbm %s668_s1, 2048 }
  0x15   :  { %s30_s27 = sshll.u32 %s569_s26, 4  ;;  %p493_p8 = scmp.ne.s32.totalorder %s668_s1, %s492_s30  ;;  %s31_s27 = int_to_ptr.vmem [resolvable:$true] %s30_s27 }
  0x16   :  { %p496_p9 = scmp.lt.u32.totalorder %s492_s30, %s668_s1 }
  0x18   :  { %p498_p10 = pnand %p496_p9, %p493_p8 }
  0x1a   :  { %501 = shalt.err (!%p498_p10)
}
  0x1b   :  { %s502_s8 = scalar_lea.vmem %s31_s27, 2048  ;;  %p507_p12 = scmp.lt.s32.totalorder %s31_s27, %s31_s27 }
  0x1c   :  { %p503_p11 = scmp.ne.s32.totalorder %s31_s27, %s502_s8  ;;  %p508_p13 = scmp.lt.s32.totalorder %s502_s8, %s502_s8 }
  0x1e   :  { %p509_p0 = por %p508_p13, %p507_p12 }
  0x20   :  { %p510_p1 = pnand %p509_p0, %p503_p11 }
  0x22   :  { %513 = shalt.err (!%p510_p1)
}
  0x23   :  { %36 = dma.hbm_to_vmem [thread:$0]  %s668_s1, 2048, %s31_s27, [#allocation6], %s567_s22, %s567_s22, %s568_s23  }
  0x24   :  { %558 = dma.done.wait [#allocation3], 2048  }
  0x25   :  { %559 = vsyncadd [#allocation3], 4294965248 }
  0x26   :  { %560 = dma.done.wait [#allocation6], 2048  }
  0x27   :  { %561 = vsyncadd [#allocation6], 4294965248  ;;  %v59_v0 = vld [vmem:[#allocation5] sm:$0xff]  ;;  %v60_v1 = vld [vmem:[#allocation5 + $0x8] sm:$0xff]  ;;  %s570_s1 = smov [#allocation7]  }
  0x28   :  { %v61_v2 = vld [vmem:[#allocation5 + $0x10] sm:$0xff]  ;;  %v416_v3 = vpack.c.bf16 %v60_v1, %v59_v0  ;;  %v62_v4 = vld [vmem:[#allocation5 + $0x18] sm:$0xff]  ;;  %v63_v6 = vld [vmem:[#allocation5 + $0x20] sm:$0xff]  ;;  %s301_s10 = sshll.u32 %s570_s1, 4  ;;  %s302_s10 = int_to_ptr.vmem [resolvable:$true] %s301_s10 }
  0x29   :  { %v420_v5 = vpack.c.bf16 %v62_v4, %v61_v2  ;;  %v64_v7 = vld [vmem:[#allocation5 + $0x28] sm:$0xff]  ;;  %v43_v9 = vld [vmem:[#allocation2] sm:$0xff]  ;;  %v65_v10 = vld [vmem:[#allocation5 + $0x30] sm:$0xff]  ;;  %s514_s11 = scalar_lea.vmem %s302_s10, 2048  ;;  %p519_p3 = scmp.lt.s32.totalorder %s302_s10, %s302_s10 }
  0x2a   :  { %417 = vmatprep.subr.bf16.mxu0 %v416_v3  ;;  %448 = vmatprep.subr.bf16.mxu1 %v416_v3  ;;  %v424_v8 = vpack.c.bf16 %v64_v7, %v63_v6  ;;  %v66_v11 = vld [vmem:[#allocation5 + $0x38] sm:$0xff]  ;;  %v51_v12 = vld [vmem:[#allocation2 + $0x40] sm:$0xff]  ;;  %v68_v15 = vld [vmem:[#allocation5 + $0x48] sm:$0xff]  ;;  %p515_p2 = scmp.ne.s32.totalorder %s302_s10, %s514_s11  ;;  %p520_p4 = scmp.lt.s32.totalorder %s514_s11, %s514_s11 }
  0x2b   :  { %419 = vmatpush3.bf16.msra.mxu0 %v416_v3  ;;  %456 = vmatpush3.bf16.msra.mxu1 %v416_v3  ;;  %v428_v13 = vpack.c.bf16 %v66_v11, %v65_v10  ;;  %v67_v14 = vld [vmem:[#allocation5 + $0x40] sm:$0xff]  ;;  %v69_v17 = vld [vmem:[#allocation5 + $0x50] sm:$0xff]  ;;  %v70_v18 = vld [vmem:[#allocation5 + $0x58] sm:$0xff] }
  0x2c   :  { %421 = vmatprep.subr.bf16.mxu0 %v420_v5  ;;  %449 = vmatprep.subr.bf16.mxu1 %v420_v5  ;;  %v432_v16 = vpack.c.bf16 %v68_v15, %v67_v14  ;;  %v436_v19 = vpack.c.bf16 %v70_v18, %v69_v17  ;;  %v71_v20 = vld [vmem:[#allocation5 + $0x60] sm:$0xff]  ;;  %v72_v21 = vld [vmem:[#allocation5 + $0x68] sm:$0xff]  ;;  %v73_v23 = vld [vmem:[#allocation5 + $0x70] sm:$0xff]  ;;  %p521_p5 = por %p520_p4, %p519_p3 }
  0x2d   :  { %392 = vmatprep.mubr.f32.mxu0 %v43_v9  ;;  %404 = vmatprep.mubr.f32.mxu1 %v51_v12  ;;  %v440_v22 = vpack.c.bf16 %v72_v21, %v71_v20  ;;  %v74_v24 = vld [vmem:[#allocation5 + $0x78] sm:$0xff]  ;;  %v44_v26 = vld [vmem:[#allocation2 + $0x8] sm:$0xff]  ;;  %v45_v28 = vld [vmem:[#allocation2 + $0x10] sm:$0xff] }
  0x2e   :  { %v444_v25 = vpack.c.bf16 %v74_v24, %v73_v23  ;;  %v52_v27 = vld [vmem:[#allocation2 + $0x48] sm:$0xff]  ;;  %v53_v29 = vld [vmem:[#allocation2 + $0x50] sm:$0xff]  ;;  %v46_v30 = vld [vmem:[#allocation2 + $0x18] sm:$0xff]  ;;  %p522_p6 = pnand %p521_p5, %p515_p2 }
  0x2f   :  { %423 = vmatpush3.bf16.msra.mxu0 %v420_v5  ;;  %457 = vmatpush3.bf16.msra.mxu1 %v420_v5  ;;  %v54_v31 = vld [vmem:[#allocation2 + $0x58] sm:$0xff]  ;;  %v47_v32 = vld [vmem:[#allocation2 + $0x20] sm:$0xff]  ;;  %v48_v34 = vld [vmem:[#allocation2 + $0x28] sm:$0xff] }
  0x30   :  { %425 = vmatprep.subr.bf16.mxu0 %v424_v8  ;;  %450 = vmatprep.subr.bf16.mxu1 %v424_v8  ;;  %v55_v33 = vld [vmem:[#allocation2 + $0x60] sm:$0xff]  ;;  %v56_v35 = vld [vmem:[#allocation2 + $0x68] sm:$0xff]  ;;  %v49_v36 = vld [vmem:[#allocation2 + $0x30] sm:$0xff] }
  0x31   :  { %v57_v37 = vld [vmem:[#allocation2 + $0x70] sm:$0xff]  ;;  %v50_v38 = vld [vmem:[#allocation2 + $0x38] sm:$0xff] }
  0x32   :  { %v58_v39 = vld [vmem:[#allocation2 + $0x78] sm:$0xff] }
  0x33   :  { %427 = vmatpush3.bf16.msra.mxu0 %v424_v8  ;;  %458 = vmatpush3.bf16.msra.mxu1 %v424_v8 }
  0x34   :  { %429 = vmatprep.subr.bf16.mxu0 %v428_v13  ;;  %451 = vmatprep.subr.bf16.mxu1 %v428_v13 }
  0x37   :  { %431 = vmatpush3.bf16.msra.mxu0 %v428_v13  ;;  %459 = vmatpush3.bf16.msra.mxu1 %v428_v13 }
  0x38   :  { %433 = vmatprep.subr.bf16.mxu0 %v432_v16  ;;  %452 = vmatprep.subr.bf16.mxu1 %v432_v16 }
  0x3b   :  { %435 = vmatpush3.bf16.msra.mxu0 %v432_v16  ;;  %460 = vmatpush3.bf16.msra.mxu1 %v432_v16 }
  0x3c   :  { %437 = vmatprep.subr.bf16.mxu0 %v436_v19  ;;  %453 = vmatprep.subr.bf16.mxu1 %v436_v19 }
  0x3f   :  { %439 = vmatpush3.bf16.msra.mxu0 %v436_v19  ;;  %461 = vmatpush3.bf16.msra.mxu1 %v436_v19 }
  0x40   :  { %441 = vmatprep.subr.bf16.mxu0 %v440_v22  ;;  %454 = vmatprep.subr.bf16.mxu1 %v440_v22 }
  0x43   :  { %443 = vmatpush3.bf16.msra.mxu0 %v440_v22  ;;  %462 = vmatpush3.bf16.msra.mxu1 %v440_v22 }
  0x44   :  { %445 = vmatprep.subr.bf16.mxu0 %v444_v25  ;;  %455 = vmatprep.subr.bf16.mxu1 %v444_v25 }
  0x47   :  { %447 = vmatpush3.bf16.msra.mxu0 %v444_v25  ;;  %463 = vmatpush3.bf16.msra.mxu1 %v444_v25 }
  0x4a   :  { %393 = vmatmul.mubr.f32.vlgmr.msra.gmra.mrb[0].mxu0 %v44_v26  ;;  %405 = vmatmul.mubr.f32.vlgmr.msra.gmra.mrb[0].mxu1 %v52_v27 }
  0x4b   :  { %395 = vmatprep.mubr.f32.mxu0 %v45_v28  ;;  %407 = vmatprep.mubr.f32.mxu1 %v53_v29 }
  0x4e   :  { %396 = vmatmul.mubr.f32.gmra.mrb[2].mxu0 %v46_v30  ;;  %408 = vmatmul.mubr.f32.gmra.mrb[2].mxu1 %v54_v31 }
  0x4f   :  { %398 = vmatprep.mubr.f32.mxu0 %v47_v32  ;;  %410 = vmatprep.mubr.f32.mxu1 %v55_v33 }
  0x52   :  { %399 = vmatmul.mubr.f32.gmra.mrb[4].mxu0 %v48_v34  ;;  %411 = vmatmul.mubr.f32.gmra.mrb[4].mxu1 %v56_v35 }
  0x53   :  { %401 = vmatprep.mubr.f32.mxu0 %v49_v36  ;;  %413 = vmatprep.mubr.f32.mxu1 %v57_v37 }
  0x56   :  { %402 = vmatmul.mubr.f32.gmra.mrb[6].mxu0 %v50_v38  ;;  %414 = vmatmul.mubr.f32.gmra.mrb[6].mxu1 %v58_v39 }
 0x11d   :  { %v394_v40 = vpop.f32.mrb[0].mxu0  ;;  %v622_v41 = vpop.f32.mrb[0].mxu1 }
 0x11e   :  { %221 = vst [vmem:[#allocation7 + $0x8] sm:$0xff] %v394_v40  ;;  %v259_v42 = vmul.f32 %v394_v40, %v394_v40  ;;  %v141_v43 = vpop.f32.mrb[1].mxu0  ;;  %229 = vst [vmem:[#allocation7 + $0x48] sm:$0xff] %v622_v41  ;;  %v625_v44 = vpop.f32.mrb[1].mxu1 }
 0x11f   :  { %220 = vst [vmem:[#allocation7] sm:$0xff] %v141_v43  ;;  %v236_v45 = vadd.f32 %v394_v40, %v141_v43  ;;  %v258_v46 = vmul.f32 %v141_v43, %v141_v43  ;;  %228 = vst [vmem:[#allocation7 + $0x40] sm:$0xff] %v625_v44 }
 0x121   :  { %v274_v47 = vadd.f32 %v259_v42, %v258_v46  ;;  %v397_v48 = vpop.f32.mrb[2].mxu0  ;;  %v628_v49 = vpop.f32.mrb[2].mxu1 }
 0x122   :  { %223 = vst [vmem:[#allocation7 + $0x18] sm:$0xff] %v397_v48  ;;  %v151_v50 = vpop.f32.mrb[3].mxu0  ;;  %231 = vst [vmem:[#allocation7 + $0x58] sm:$0xff] %v628_v49  ;;  %v191_v51 = vpop.f32.mrb[3].mxu1  ;;  %v261_v54 = vmul.f32 %v397_v48, %v397_v48 }
 0x123   :  { %222 = vst [vmem:[#allocation7 + $0x10] sm:$0xff] %v151_v50  ;;  %v237_v52 = vadd.f32 %v236_v45, %v151_v50  ;;  %v260_v53 = vmul.f32 %v151_v50, %v151_v50  ;;  %230 = vst [vmem:[#allocation7 + $0x50] sm:$0xff] %v191_v51 }
 0x125   :  { %v275_v55 = vadd.f32 %v274_v47, %v260_v53  ;;  %v400_v56 = vpop.f32.mrb[4].mxu0  ;;  %v238_v57 = vadd.f32 %v397_v48, %v237_v52  ;;  %v412_v58 = vpop.f32.mrb[4].mxu1 }
 0x126   :  { %225 = vst [vmem:[#allocation7 + $0x28] sm:$0xff] %v400_v56  ;;  %v161_v59 = vpop.f32.mrb[5].mxu0  ;;  %233 = vst [vmem:[#allocation7 + $0x68] sm:$0xff] %v412_v58  ;;  %v201_v60 = vpop.f32.mrb[5].mxu1  ;;  %v263_v0 = vmul.f32 %v400_v56, %v400_v56 }
 0x127   :  { %224 = vst [vmem:[#allocation7 + $0x20] sm:$0xff] %v161_v59  ;;  %v239_v61 = vadd.f32 %v238_v57, %v161_v59  ;;  %v262_v62 = vmul.f32 %v161_v59, %v161_v59  ;;  %v276_v63 = vadd.f32 %v275_v55, %v261_v54  ;;  %232 = vst [vmem:[#allocation7 + $0x60] sm:$0xff] %v201_v60 }
 0x129   :  { %v277_v1 = vadd.f32 %v276_v63, %v262_v62  ;;  %v403_v2 = vpop.f32.mrb[6].mxu0  ;;  %v240_v3 = vadd.f32 %v400_v56, %v239_v61  ;;  %v415_v4 = vpop.f32.mrb[6].mxu1 }
 0x12a   :  { %227 = vst [vmem:[#allocation7 + $0x38] sm:$0xff] %v403_v2  ;;  %v171_v5 = vpop.f32.mrb[7].mxu0  ;;  %235 = vst [vmem:[#allocation7 + $0x78] sm:$0xff] %v415_v4  ;;  %v211_v6 = vpop.f32.mrb[7].mxu1 }
 0x12b   :  { %226 = vst [vmem:[#allocation7 + $0x30] sm:$0xff] %v171_v5  ;;  %v241_v7 = vadd.f32 %v240_v3, %v171_v5  ;;  %v264_v8 = vmul.f32 %v171_v5, %v171_v5  ;;  %v278_v9 = vadd.f32 %v277_v1, %v263_v0  ;;  %234 = vst [vmem:[#allocation7 + $0x70] sm:$0xff] %v211_v6 }
 0x12c   :  { %525 = shalt.err (!%p522_p6)
}
 0x12d   :  { %s526_s14 = scalar_lea.hbm %s669_s2, 2048 }
 0x12e   :  { %p527_p7 = scmp.ne.s32.totalorder %s669_s2, %s526_s14  ;;  %p530_p8 = scmp.lt.u32.totalorder %s526_s14, %s669_s2 }
 0x130   :  { %p532_p9 = pnand %p530_p8, %p527_p7 }
 0x132   :  { %535 = shalt.err (!%p532_p9)
}
 0x133   :  { %307 = dma.vmem_to_hbm [thread:$0]  %s302_s10, 2048, %s669_s2, [#allocation4], %s567_s22, %s567_s22, %s568_s23   ;;  %v265_v10 = vmul.f32 %v403_v2, %v403_v2  ;;  %v242_v11 = vadd.f32 %v403_v2, %v241_v7  ;;  %v279_v12 = vadd.f32 %v278_v9, %v264_v8  ;;  %v266_v13 = vmul.f32 %v625_v44, %v625_v44 }
 0x134   :  { %v267_v16 = vmul.f32 %v622_v41, %v622_v41  ;;  %v268_v19 = vmul.f32 %v191_v51, %v191_v51  ;;  %v269_v22 = vmul.f32 %v628_v49, %v628_v49  ;;  %v270_v25 = vmul.f32 %v201_v60, %v201_v60  ;;  %s571_s2 = smov [#allocation8]  }
 0x135   :  { %v280_v14 = vadd.f32 %v279_v12, %v265_v10  ;;  %v243_v15 = vadd.f32 %v242_v11, %v625_v44  ;;  %v271_v28 = vmul.f32 %v412_v58, %v412_v58  ;;  %v272_v31 = vmul.f32 %v211_v6, %v211_v6  ;;  %s314_s21 = sshll.u32 %s571_s2, 4  ;;  %s315_s21 = int_to_ptr.vmem [resolvable:$true] %s314_s21 }
 0x136   :  { %v273_v34 = vmul.f32 %v415_v4, %v415_v4  ;;  %s536_s22 = scalar_lea.vmem %s315_s21, 32  ;;  %p541_p11 = scmp.lt.s32.totalorder %s315_s21, %s315_s21 }
 0x137   :  { %v281_v17 = vadd.f32 %v280_v14, %v266_v13  ;;  %v244_v18 = vadd.f32 %v622_v41, %v243_v15  ;;  %p537_p10 = scmp.ne.s32.totalorder %s315_s21, %s536_s22  ;;  %p542_p12 = scmp.lt.s32.totalorder %s536_s22, %s536_s22 }
 0x139   :  { %v245_v20 = vadd.f32 %v244_v18, %v191_v51  ;;  %v282_v21 = vadd.f32 %v281_v17, %v267_v16  ;;  %p543_p13 = por %p542_p12, %p541_p11 }
 0x13b   :  { %v283_v23 = vadd.f32 %v282_v21, %v268_v19  ;;  %v246_v24 = vadd.f32 %v628_v49, %v245_v20  ;;  %p544_p0 = pnand %p543_p13, %p537_p10 }
 0x13d   :  { %v247_v26 = vadd.f32 %v246_v24, %v201_v60  ;;  %v284_v27 = vadd.f32 %v283_v23, %v269_v22 }
 0x13f   :  { %v285_v29 = vadd.f32 %v284_v27, %v270_v25  ;;  %v248_v30 = vadd.f32 %v412_v58, %v247_v26 }
 0x141   :  { %v249_v32 = vadd.f32 %v248_v30, %v211_v6  ;;  %v286_v33 = vadd.f32 %v285_v29, %v271_v28 }
 0x143   :  { %v250_v35 = vadd.f32 %v415_v4, %v249_v32  ;;  %v287_v36 = vadd.f32 %v286_v33, %v272_v31 }
 0x145   :  { %v251_v37 = vrot.slane %v250_v35, 4  ;;  %v288_v38 = vadd.f32 %v287_v36, %v273_v34 }
 0x147   :  { %v252_v39 = vadd.f32 %v251_v37, %v250_v35  ;;  %v289_v40 = vrot.slane %v288_v38, 4 }
 0x149   :  { %v253_v41 = vrot.slane %v252_v39, 2  ;;  %v290_v42 = vadd.f32 %v289_v40, %v288_v38 }
 0x14b   :  { %v254_v43 = vadd.f32 %v253_v41, %v252_v39  ;;  %v291_v44 = vrot.slane %v290_v42, 2 }
 0x14d   :  { %v255_v45 = vrot.slane %v254_v43, 1  ;;  %v292_v46 = vadd.f32 %v291_v44, %v290_v42 }
 0x14f   :  { %v256_v47 = vadd.f32 %v255_v45, %v254_v43  ;;  %v293_v48 = vrot.slane %v292_v46, 1 }
 0x151   :  { %257 = vst [vmem:[#allocation8] sm:$0x1] %v256_v47  ;;  %v294_v49 = vadd.f32 %v293_v48, %v292_v46 }
 0x153   :  { %295 = vst [vmem:[#allocation8 + $0x1] sm:$0x1] %v294_v49 }
 0x154   :  { %547 = shalt.err (!%p544_p0)
}
 0x155   :  { %s548_s25 = scalar_lea.hbm %s670_s3, 32 }
 0x156   :  { %p549_p1 = scmp.ne.s32.totalorder %s670_s3, %s548_s25  ;;  %p552_p2 = scmp.lt.u32.totalorder %s548_s25, %s670_s3 }
 0x158   :  { %p554_p3 = pnand %p552_p2, %p549_p1 }
 0x15a   :  { %557 = shalt.err (!%p554_p3)
}
 0x15b   :  { %317 = dma.vmem_to_hbm [thread:$0]  %s315_s21, 32, %s670_s3, [#allocation9]  }
 0x15c   :  { %562 = dma.done.wait [#allocation4], 2048  }
 0x15d   :  { %563 = vsyncadd [#allocation4], 4294965248 }
 0x15e   :  { %564 = dma.done.wait [#allocation9], 32  }
 0x15f   :  { %565 = vsyncadd [#allocation9], 4294967264 }
 0x160   :  { %324 = vsyncpa [#allocation3], 1 }
 0x161   :  { %325 = vsyncpa [#allocation6], 1 }
 0x162   :  { %326 = vsyncpa [#allocation4], 1 }
 0x163   :  { %327 = vsyncpa [#allocation9], 1 }

</bundles_post_ra>
